<compile_context>
chip_gen: v7x
topology: tpu7x:2x2x1
jax: 0.10.0
libtpu: 0.0.40
codegen_flags: <defaults>
</compile_context>

<pallas_src>
import functools

import jax
import jax.numpy as jnp
from jax.experimental import pallas as pl
from jax.experimental.pallas import tpu as pltpu


LANE = 128  # single lane-dense output slab; both heads packed into one 128-lane vreg width


def _prob_output_kernel(mu_ref, sigma_ref, w_ref, b_ref, *rest, d_in, d_out, training):
    if training:
        eps_ref, out_ref = rest
    else:
        (out_ref,) = rest

    # Both heads in one lane slab: mu head -> lanes [0, d_out), sigma head -> [d_out, 2*d_out).
    # Two statically-sliced MXU pushes accumulated in registers (no VMEM scratch round-trip).
    z = (jnp.dot(mu_ref[...], w_ref[:d_in, :], preferred_element_type=jnp.float32)
         + jnp.dot(sigma_ref[...], w_ref[d_in:, :], preferred_element_type=jnp.float32)
         + b_ref[...])

    # Numerically-stable softplus over the full 128-lane vreg (EUP slot) + 1e-6.
    sp = jnp.maximum(z, 0.0) + jnp.log1p(jnp.exp(-jnp.abs(z))) + 1e-6

    logits_mu = z[:, :d_out]
    logits_sigma = sp[:, d_out:2 * d_out]

    if training:
        sampled = logits_mu + logits_sigma * eps_ref[...]          # reparameterization trick
    else:
        sampled = logits_mu

    # ONE full-width, lane-dense store: [sampled | logits_sigma | padded junk].
    out_ref[...] = jnp.concatenate([sampled, sp[:, d_out:]], axis=1).astype(out_ref.dtype)


def init_fused_params(w_mu, b_mu, w_sigma):
    """One-time parameter packing (do NOT call per forward step).

    w_mu, w_sigma: (D_out, D_in) PyTorch layout; b_mu: (D_out,).  The sigma Linear has no bias
    (spec: nn.Linear(..., bias=False)).

    Returns a block-diagonal, transposed weight (2*D_in, 128) with the mu head in lanes
    [0, D_out) and the sigma head in lanes [D_out, 2*D_out), plus a (1, 128) fused bias row.
    """
    d_out, d_in = w_mu.shape
    # TODO(synk): for 2*d_out > 128 fall back to a per-head 128-padded two-slab layout.
    assert 2 * d_out <= LANE, "single-slab packing requires 2*output_dim <= 128"

    w_fused = jnp.zeros((2 * d_in, LANE), jnp.float32)
    w_fused = w_fused.at[:d_in, :d_out].set(w_mu.T.astype(jnp.float32))
    w_fused = w_fused.at[d_in:, d_out:2 * d_out].set(w_sigma.T.astype(jnp.float32))

    b_fused = jnp.zeros((1, LANE), jnp.float32)
    b_fused = b_fused.at[0, :d_out].set(b_mu.astype(jnp.float32))
    return w_fused, b_fused


@functools.partial(jax.jit, static_argnames=("d_out", "training", "batch_tile"))
def probabilistic_output_layer(mu, sigma, w_fused, b_fused, eps=None, *,
                               d_out, training=True, batch_tile=None):
    """mu, sigma: (B, D_in) f32; w_fused/b_fused from init_fused_params.
    eps: (B, d_out) f32 standard-normal noise (required iff training).

    Returns (sampled_logits, logits_sigma), each (B, d_out) f32.
    """
    B, d_in = mu.shape
    k, n = w_fused.shape
    assert k == 2 * d_in and n == LANE

    # Batch-tile policy: whole batch per step for small B; cap at 512 rows so large batches tile
    # into >=512-row, MXU-row-aligned steps (v7x: consider halving + grid>=2 so both TCs engage).
    tb = batch_tile if batch_tile is not None else min(B, 512)
    assert B % tb == 0, "batch must be a multiple of the batch tile"
    grid = (B // tb,)

    kernel = functools.partial(_prob_output_kernel, d_in=d_in, d_out=d_out, training=training)

    in_specs = [
        pl.BlockSpec((tb, d_in), lambda i: (i, 0)),   # mu
        pl.BlockSpec((tb, d_in), lambda i: (i, 0)),   # sigma
        pl.BlockSpec((k, n), lambda i: (0, 0)),       # fused weight (grid-invariant)
        pl.BlockSpec((1, n), lambda i: (0, 0)),       # fused bias row
    ]
    args = (mu, sigma, w_fused, b_fused)
    eps_bytes = 0
    if training:
        assert eps is not None and eps.shape == (B, d_out)
        in_specs.append(pl.BlockSpec((tb, d_out), lambda i: (i, 0)))   # eps
        args = args + (eps,)
        eps_bytes = 4 * B * d_out

    cost = pl.CostEstimate(
        flops=4 * B * d_in * d_out + 4 * B * n,        # two real d_in x d_out blocks + bias/sample
        transcendentals=2 * B * n,                     # exp + log1p over the full lane slab
        bytes_accessed=4 * (mu.size + sigma.size + w_fused.size + b_fused.size + B * n) + eps_bytes,
    )

    out = pl.pallas_call(
        kernel,
        out_shape=jax.ShapeDtypeStruct((B, n), jnp.float32),
        grid_spec=pltpu.PrefetchScalarGridSpec(
            num_scalar_prefetch=0,
            grid=grid,
            in_specs=in_specs,
            out_specs=pl.BlockSpec((tb, n), lambda i: (i, 0)),
        ),
        compiler_params=pltpu.CompilerParams(dimension_semantics=("parallel",)),
        cost_estimate=cost,
    )(*args)

    # TODO(synk): downstream consumers could take the padded (B, 128) slab directly and skip
    # these two post-slices (each is an extra XLA copy at these tiny sizes).
    sampled_logits = out[:, :d_out]
    logits_sigma = out[:, d_out:2 * d_out]
    return sampled_logits, logits_sigma


if __name__ == "__main__":
    # Small shapes consistent with the module: batch=8, input_dim=32, output_dim=32
    B, D_IN, D_OUT = 8, 32, 32

    key = jax.random.PRNGKey(0)
    k_mu, k_sig, k_wmu, k_bmu, k_wsig, k_eps = jax.random.split(key, 6)

    # nn.Linear-style init: U[-1/sqrt(in), 1/sqrt(in)]
    bound = 1.0 / (D_IN ** 0.5)
    w_mu = jax.random.uniform(k_wmu, (D_OUT, D_IN), jnp.float32, -bound, bound)
    b_mu = jax.random.uniform(k_bmu, (D_OUT,), jnp.float32, -bound, bound)
    w_sigma = jax.random.uniform(k_wsig, (D_OUT, D_IN), jnp.float32, -bound, bound)

    mu_in = jax.random.normal(k_mu, (B, D_IN), jnp.float32)
    sigma_in = jax.random.normal(k_sig, (B, D_IN), jnp.float32)
    eps = jax.random.normal(k_eps, (B, D_OUT), jnp.float32)   # == torch.randn_like(logits_sigma)

    # One-time packing (outside the hot path: no per-call transposes / padding).
    w_fused, b_fused = init_fused_params(w_mu, b_mu, w_sigma)

    # Pure-JAX reference (matches the PyTorch module: sigma head has no bias).
    ref_mu = mu_in @ w_mu.T + b_mu
    ref_sig = jax.nn.softplus(sigma_in @ w_sigma.T) + 1e-6
    ref_sampled = ref_mu + ref_sig * eps

    # ---- eval mode: sampled_logits must equal logits_mu (no eps input / sample path) ----
    s_eval, sig_eval = probabilistic_output_layer(
        mu_in, sigma_in, w_fused, b_fused, d_out=D_OUT, training=False)
    jax.block_until_ready((s_eval, sig_eval))
    assert s_eval.shape == (B, D_OUT) and sig_eval.shape == (B, D_OUT)
    assert jnp.allclose(s_eval, ref_mu, atol=1e-4, rtol=1e-4)
    assert jnp.allclose(sig_eval, ref_sig, atol=1e-4, rtol=1e-4)

    # ---- training mode: same eps as the reference -> exact reparameterized-sample match ----
    s_tr, sig_tr = probabilistic_output_layer(
        mu_in, sigma_in, w_fused, b_fused, eps, d_out=D_OUT, training=True)
    s_tr2, _ = probabilistic_output_layer(
        mu_in, sigma_in, w_fused, b_fused, eps, d_out=D_OUT, training=True)
    jax.block_until_ready((s_tr, sig_tr, s_tr2))

    assert jnp.allclose(sig_tr, ref_sig, atol=1e-4, rtol=1e-4)
    assert jnp.allclose(s_tr, ref_sampled, atol=1e-4, rtol=1e-4)
    assert jnp.allclose(s_tr, s_tr2, atol=0.0, rtol=0.0)   # same eps -> identical output

    print("KERNEL_OK")
</pallas_src>

<mosaic_0001>
module attributes {stable_mosaic.version = 11 : i64} {
  func.func @_prob_output_kernel(%arg0: i32, %arg1: memref<8x32xf32, #tpu.memory_space<vmem>>, %arg2: memref<8x32xf32, #tpu.memory_space<vmem>>, %arg3: memref<64x128xf32, #tpu.memory_space<vmem>>, %arg4: memref<1x128xf32, #tpu.memory_space<vmem>>, %arg5: memref<8x128xf32, #tpu.memory_space<vmem>>) attributes {dimension_semantics = [#tpu.dimension_semantics<parallel>], iteration_bounds = array<i64: 1>, scalar_prefetch = 0 : i64, scratch_operands = 0 : i64, tpu.core_type = #tpu.core_type<tc>, window_params = [{transform_indices = @transform_0, window_bounds = array<i64: 8, 32>}, {transform_indices = @transform_1, window_bounds = array<i64: 8, 32>}, {pipeline_mode = #tpu.pipeline_mode<synchronous>, transform_indices = @transform_2, window_bounds = array<i64: 64, 128>}, {pipeline_mode = #tpu.pipeline_mode<synchronous>, transform_indices = @transform_3, window_bounds = array<i64: 1, 128>}, {transform_indices = @transform_4, window_bounds = array<i64: 8, 128>}]} {
    %c0 = arith.constant 0 : index
    %c0_0 = arith.constant 0 : index
    %0 = vector.load %arg1[%c0, %c0_0] : memref<8x32xf32, #tpu.memory_space<vmem>>, vector<8x32xf32>
    %c0_1 = arith.constant 0 : index
    %c0_2 = arith.constant 0 : index
    %1 = vector.load %arg3[%c0_1, %c0_2] : memref<64x128xf32, #tpu.memory_space<vmem>>, vector<32x128xf32>
    %cst = arith.constant dense<0.000000e+00> : vector<8x128xf32>
    %2 = tpu.matmul %0, %1, %cst {dimension_numbers = #tpu.dot_dimension_numbers<[1], [0], [0], [1], [0, 0, 1, 1], [], []>} : vector<8x32xf32>, vector<32x128xf32>, vector<8x128xf32> -> vector<8x128xf32>
    %c0_3 = arith.constant 0 : index
    %c0_4 = arith.constant 0 : index
    %3 = vector.load %arg2[%c0_3, %c0_4] : memref<8x32xf32, #tpu.memory_space<vmem>>, vector<8x32xf32>
    %c32 = arith.constant 32 : index
    %c0_5 = arith.constant 0 : index
    %4 = vector.load %arg3[%c32, %c0_5] : memref<64x128xf32, #tpu.memory_space<vmem>>, vector<32x128xf32>
    %cst_6 = arith.constant dense<0.000000e+00> : vector<8x128xf32>
    %5 = tpu.matmul %3, %4, %cst_6 {dimension_numbers = #tpu.dot_dimension_numbers<[1], [0], [0], [1], [0, 0, 1, 1], [], []>} : vector<8x32xf32>, vector<32x128xf32>, vector<8x128xf32> -> vector<8x128xf32>
    %6 = arith.addf %2, %5 : vector<8x128xf32>
    %c0_7 = arith.constant 0 : index
    %c0_8 = arith.constant 0 : index
    %7 = vector.load %arg4[%c0_7, %c0_8] : memref<1x128xf32, #tpu.memory_space<vmem>>, vector<1x128xf32>
    %8 = vector.broadcast %7 : vector<1x128xf32> to vector<8x128xf32>
    %9 = arith.addf %6, %8 : vector<8x128xf32>
    %cst_9 = arith.constant 0.000000e+00 : f32
    %10 = vector.broadcast %cst_9 : f32 to vector<8x128xf32>
    %11 = arith.maximumf %9, %10 : vector<8x128xf32>
    %12 = math.absf %9 : vector<8x128xf32>
    %cst_10 = arith.constant 0.000000e+00 : f32
    %13 = vector.broadcast %cst_10 : f32 to vector<8x128xf32>
    %14 = arith.subf %13, %12 : vector<8x128xf32>
    %15 = math.exp %14 : vector<8x128xf32>
    %16 = math.log1p %15 : vector<8x128xf32>
    %17 = arith.addf %11, %16 : vector<8x128xf32>
    %cst_11 = arith.constant 9.99999997E-7 : f32
    %18 = vector.broadcast %cst_11 : f32 to vector<8x128xf32>
    %19 = arith.addf %17, %18 : vector<8x128xf32>
    %20 = vector.extract_strided_slice %9 {offsets = [0, 0], sizes = [8, 32], strides = [1, 1]} : vector<8x128xf32> to vector<8x32xf32>
    %21 = vector.extract_strided_slice %19 {offsets = [0, 32], sizes = [8, 96], strides = [1, 1]} : vector<8x128xf32> to vector<8x96xf32>
    %22 = tpu.concatenate %20, %21 in 1 : vector<8x32xf32>, vector<8x96xf32> -> vector<8x128xf32>
    %c0_12 = arith.constant 0 : index
    %c0_13 = arith.constant 0 : index
    %23 = vector.load %arg5[%c0_12, %c0_13] : memref<8x128xf32, #tpu.memory_space<vmem>>, vector<8x128xf32>
    tpu.vector_store %arg5[%c0_12, %c0_13], %22 {strides = array<i32>} : memref<8x128xf32, #tpu.memory_space<vmem>>, vector<8x128xf32>,
    return
  }
  func.func @transform_0(%arg0: i32) -> (i32, i32) {
    %c0_i32 = arith.constant 0 : i32
    %c0_i32_0 = arith.constant 0 : i32
    return %arg0, %c0_i32 : i32, i32
  }
  func.func @transform_1(%arg0: i32) -> (i32, i32) {
    %c0_i32 = arith.constant 0 : i32
    %c0_i32_0 = arith.constant 0 : i32
    return %arg0, %c0_i32 : i32, i32
  }
  func.func @transform_2(%arg0: i32) -> (i32, i32) {
    %c0_i32 = arith.constant 0 : i32
    %c0_i32_0 = arith.constant 0 : i32
    %c0_i32_1 = arith.constant 0 : i32
    return %c0_i32, %c0_i32_0 : i32, i32
  }
  func.func @transform_3(%arg0: i32) -> (i32, i32) {
    %c0_i32 = arith.constant 0 : i32
    %c0_i32_0 = arith.constant 0 : i32
    %c0_i32_1 = arith.constant 0 : i32
    return %c0_i32, %c0_i32_0 : i32, i32
  }
  func.func @transform_4(%arg0: i32) -> (i32, i32) {
    %c0_i32 = arith.constant 0 : i32
    %c0_i32_0 = arith.constant 0 : i32
    return %arg0, %c0_i32 : i32, i32
  }
}

</mosaic_0001>

<bundles_post_ra>
// kernel: probabilistic_output_layer.1
= control target key start
LH: loop header
LB: loop body
LE: loop exit
PB: predicated region body
PF: predicated region fallthrough
CT: control target
= control target key end

     0   :  { %9 = vsyncpa [#allocation3], 0  ;;  %s450_s0 = inlined_call_operand.hbm [shape: f32[8,32], index: 0, kind: input, shape index: {}]   ;;  %s451_s1 = inlined_call_operand.hbm [shape: f32[8,32], index: 1, kind: input, shape index: {}]   ;;  %s452_s2 = inlined_call_operand.hbm [shape: f32[64,128], index: 2, kind: input, shape index: {}]   ;;  %s453_s3 = inlined_call_operand.vmem [shape: f32[1,128], index: 3, kind: input, shape index: {}]   ;;  %s454_s4 = inlined_call_operand.vmem [shape: f32[8,128], index: 4, kind: output, shape index: {}]  }
   0x1   :  { %10 = vsyncpa [#allocation5], 0  ;;  %s372_s15 = smov [#allocation4]   ;;  %s373_s17 = smov [#allocation2]  }
   0x2   :  { %s27_s16 = sshll.u32 %s372_s15, 4  ;;  %s17_s18 = sshll.u32 %s373_s17, 4  ;;  %s28_s16 = int_to_ptr.vmem [resolvable:$true] %s27_s16  ;;  %s18_s18 = int_to_ptr.vmem [resolvable:$true] %s17_s18 }
   0x3   :  { %s302_s21 = scalar_lea.hbm %s451_s1, 128 }
   0x4   :  { %p303_p0 = scmp.ne.s32.totalorder %s451_s1, %s302_s21  ;;  %p306_p1 = scmp.lt.u32.totalorder %s302_s21, %s451_s1 }
   0x6   :  { %p308_p2 = pnand %p306_p1, %p303_p0 }
   0x8   :  { %311 = shalt.err (!%p308_p2)
}
   0x9   :  { %s312_s26 = scalar_lea.vmem %s28_s16, 128  ;;  %p317_p4 = scmp.lt.s32.totalorder %s28_s16, %s28_s16 }
   0xa   :  { %p313_p3 = scmp.ne.s32.totalorder %s28_s16, %s312_s26  ;;  %p318_p5 = scmp.lt.s32.totalorder %s312_s26, %s312_s26 }
   0xc   :  { %p319_p6 = por %p318_p5, %p317_p4 }
   0xe   :  { %p320_p7 = pnand %p319_p6, %p313_p3 }
  0x10   :  { %323 = shalt.err (!%p320_p7)
}
  0x11   :  { %30 = dma.hbm_to_vmem [thread:$0]  %s451_s1, 128, %s28_s16, [#allocation5]  }
  0x12   :  { %s324_s5 = scalar_lea.hbm %s450_s0, 128 }
  0x13   :  { %p325_p8 = scmp.ne.s32.totalorder %s450_s0, %s324_s5  ;;  %p328_p9 = scmp.lt.u32.totalorder %s324_s5, %s450_s0 }
  0x15   :  { %p330_p10 = pnand %p328_p9, %p325_p8 }
  0x17   :  { %333 = shalt.err (!%p330_p10)
}
  0x18   :  { %s334_s10 = scalar_lea.vmem %s18_s18, 128  ;;  %p339_p12 = scmp.lt.s32.totalorder %s18_s18, %s18_s18 }
  0x19   :  { %p335_p11 = scmp.ne.s32.totalorder %s18_s18, %s334_s10  ;;  %p340_p13 = scmp.lt.s32.totalorder %s334_s10, %s334_s10 }
  0x1b   :  { %p341_p0 = por %p340_p13, %p339_p12 }
  0x1d   :  { %p342_p1 = pnand %p341_p0, %p335_p11 }
  0x1f   :  { %345 = shalt.err (!%p342_p1)
}
  0x20   :  { %20 = dma.hbm_to_vmem [thread:$0]  %s450_s0, 128, %s18_s18, [#allocation3]  }
  0x21   :  { %s374_s12 = smov [#allocation6]   ;;  %s346_s16 = scalar_lea.hbm %s452_s2, 1024 }
  0x22   :  { %s36_s13 = sshll.u32 %s374_s12, 4  ;;  %p347_p2 = scmp.ne.s32.totalorder %s452_s2, %s346_s16  ;;  %s37_s13 = int_to_ptr.vmem [resolvable:$true] %s36_s13 }
  0x23   :  { %p350_p3 = scmp.lt.u32.totalorder %s346_s16, %s452_s2 }
  0x25   :  { %p352_p4 = pnand %p350_p3, %p347_p2 }
  0x27   :  { %355 = shalt.err (!%p352_p4)
}
  0x28   :  { %s356_s22 = scalar_lea.vmem %s37_s13, 1024  ;;  %p361_p6 = scmp.lt.s32.totalorder %s37_s13, %s37_s13 }
  0x29   :  { %p357_p5 = scmp.ne.s32.totalorder %s37_s13, %s356_s22  ;;  %p362_p7 = scmp.lt.s32.totalorder %s356_s22, %s356_s22 }
  0x2b   :  { %p363_p8 = por %p362_p7, %p361_p6 }
  0x2d   :  { %p364_p9 = pnand %p363_p8, %p357_p5 }
  0x2f   :  { %367 = shalt.err (!%p364_p9)
}
  0x30   :  { %s375_s0 = smov 128   ;;  %s376_s18 = smov 8  }
  0x31   :  { %42 = dma.hbm_to_vmem [thread:$0]  %s452_s2, 1024, %s37_s13, [#allocation5], %s375_s0, %s375_s0, %s376_s18  }
  0x32   :  { %368 = dma.done.wait [#allocation3], 128  }
  0x33   :  { %369 = vsyncadd [#allocation3], 4294967168 }
  0x34   :  { %370 = dma.done.wait [#allocation5], 1152  }
  0x35   :  { %371 = vsyncadd [#allocation5], 4294966144  ;;  %v377_v0 = vmov 0.0|0.0   ;;  %vm378_vm0 = vmmov 0   ;;  %v379_v1 = vmov 0.0   ;;  %v60_v2 = vld [vmem:[#allocation6 + $0x20] sm:$0xff] }
  0x36   :  { %278 = vmatprep.subr.bf16.mxu0 %v377_v0  ;;  %284 = vmatprep.subr.bf16.mxu1 %v377_v0  ;;  %v61_v3 = vld [vmem:[#allocation6 + $0x28] sm:$0xff]  ;;  %v55_v4 = vld [vmem:[#allocation6] sm:$0xff]  ;;  %v62_v7 = vld [vmem:[#allocation6 + $0x30] sm:$0xff]  ;;  %vm64_vm1 = vcmask 261120  }
  0x37   :  { %264 = vmatprep.mubr.msk.f32.mxu0 %vm378_vm0, %v379_v1  ;;  %275 = vmatprep.mubr.msk.f32.mxu1 %vm378_vm0, %v379_v1  ;;  %v279_v5 = vpack.c.bf16 %v61_v3, %v60_v2  ;;  %v56_v6 = vld [vmem:[#allocation6 + $0x8] sm:$0xff]  ;;  %v63_v8 = vld [vmem:[#allocation6 + $0x38] sm:$0xff]  ;;  %v57_v10 = vld [vmem:[#allocation6 + $0x10] sm:$0xff] }
  0x38   :  { %v285_v9 = vpack.c.bf16 %v56_v6, %v55_v4  ;;  %v58_v11 = vld [vmem:[#allocation6 + $0x18] sm:$0xff]  ;;  %v282_v12 = vpack.c.bf16 %v63_v8, %v62_v7  ;;  %v54_v15 = vld [vmem:[#allocation2] sm:$0xff] }
  0x39   :  { %280 = vmatpush3.bf16.msra.mxu0 %v279_v5  ;;  %v288_v13 = vpack.c.bf16 %v58_v11, %v57_v10  ;;  %v59_v14 = vld [vmem:[#allocation4] sm:$0xff]  ;;  %v245_v18 = vld [vmem:[%s453_s3] ss:$0 sm:$0xff] }
  0x3a   :  { %286 = vmatpush3.bf16.msra.mxu1 %v285_v9  ;;  %281 = vmatprep.subr.bf16.mxu0 %v377_v0 }
  0x3b   :  { %287 = vmatprep.subr.bf16.mxu1 %v377_v0 }
  0x3d   :  { %283 = vmatpush3.bf16.msra.mxu0 %v282_v12 }
  0x3e   :  { %289 = vmatpush3.bf16.msra.mxu1 %v288_v13 }
  0x40   :  { %265 = vmatmul.mubr.msk.f32.vlgmr.msra.gmra.mrb[0].mxu0 %vm64_vm1, %v59_v14 }
  0x41   :  { %276 = vmatmul.mubr.msk.f32.vlgmr.msra.gmra.mrb[0].mxu1 %vm64_vm1, %v54_v15 }
 0x113   :  { %v134_v16 = vpop.f32.mrb[0].mxu0 }
 0x114   :  { %v207_v17 = vpop.f32.mrb[0].mxu1  ;;  %v266_v19 = vpop.f32.mrb[1].mxu0 }
 0x115   :  { %v208_v20 = vadd.f32 %v207_v17, %v134_v16  ;;  %v277_v21 = vpop.f32.mrb[1].mxu1 }
 0x117   :  { %v218_v22 = vadd.f32 %v245_v18, %v208_v20 }
 0x119   :  { %v220_v23 = vand.u32 2147483647, %v218_v22  ;;  %v219_v34 = vmax.f32 %v218_v22, 0.0 }
 0x11b   :  { %v221_v24 = vsub.f32 0.0, %v220_v23 }
 0x11d   :  { %v222_v25 = vmul.f32 1.442695, %v221_v24 }
 0x11f   :  { %298 = vpow2.f32 %v222_v25 }
 0x129   :  { %v299_v26 = vpop.eup %298 }
 0x12a   :  { %v224_v27 = vadd.f32 1.0, %v299_v26  ;;  %v227_v28 = vmul.f32 -0.5, %v299_v26  ;;  %v230_v30 = vand.u32 2147483647, %v299_v26 }
 0x12c   :  { %300 = vlog2.f32 %v224_v27  ;;  %v228_v29 = vadd.f32 1.0, %v227_v28  ;;  %vm231_vm2 = vcmp.lt.f32.partialorder %v230_v30, 0.0004427343 }
 0x12e   :  { %v229_v33 = vmul.f32 %v299_v26, %v228_v29 }
 0x136   :  { %v301_v31 = vpop.eup %300 }
 0x137   :  { %v226_v32 = vmul.f32 0.6931472, %v301_v31 }
 0x139   :  { %v232_v35 = vsel %vm231_vm2, %v229_v33, %v226_v32 }
 0x13a   :  { %v233_v36 = vadd.f32 %v232_v35, %v219_v34 }
 0x13c   :  { %v234_v37 = vadd.f32 1e-06, %v233_v36 }
 0x13e   :  { %v235_v38 = vsel %vm64_vm1, %v218_v22, %v234_v37 }
 0x13f   :  { %236 = vst [vmem:[%s454_s4] sm:$0xff] %v235_v38 }
 0x140   :  { %241 = vsyncpa [#allocation3], 1 }
 0x141   :  { %242 = vsyncpa [#allocation5], 1 }

</bundles_post_ra>
